<compile_context>
chip_gen: v7x
topology: tpu7x:2x2x1
jax: 0.10.0
libtpu: 0.0.40
codegen_flags: <defaults>
</compile_context>

<pallas_src>
import functools

import jax
import jax.numpy as jnp
from jax.experimental import pallas as pl
from jax.experimental.pallas import tpu as pltpu


def _hcl_kernel(n_total, m_total, tn, tm,
                rank_ref, temp_ref, a_ref, b_ref, out_ref,
                m_a, l_a, t_a, m_b, l_b, t_b):
    i = pl.program_id(0)                 # row tile   ("parallel")
    j = pl.program_id(1)                 # class tile ("arbitrary", trailing reduction)
    last_j = pl.num_programs(1) - 1

    temp = temp_ref[0]                   # already clamp(exp(.),1,100) in the wrapper
    rank = rank_ref[0]

    @pl.when(j == 0)
    def _init():
        for m_sc, l_sc, t_sc in ((m_a, l_a, t_a), (m_b, l_b, t_b)):
            m_sc[...] = jnp.full_like(m_sc, -jnp.inf)
            l_sc[...] = jnp.zeros_like(l_sc)
            t_sc[...] = jnp.zeros_like(t_sc)

    # Target columns for this row tile live in [lo, lo + tn).
    # (Precondition, as in the reference module: labels < M.)
    lo = i * tn + n_total * rank
    col0 = j * tm
    tile_has_targets = jnp.logical_and(col0 < lo + tn, lo < col0 + tm)

    def online_update(x, m_sc, l_sc):
        # Streaming logsumexp with temperature fused into the exponent: the running
        # max is kept on RAW logits, l accumulates exp(temp*(x - m)).
        m_prev = m_sc[...]
        m_new = jnp.maximum(m_prev, jnp.max(x, axis=-1, keepdims=True))
        l_sc[...] = (l_sc[...] * jnp.exp(temp * (m_prev - m_new))
                     + jnp.sum(jnp.exp(temp * (x - m_new)), axis=-1, keepdims=True))
        m_sc[...] = m_new

    def step(mask_pad):
        x_a = a_ref[...].astype(jnp.float32)
        x_b = b_ref[...].astype(jnp.float32)

        # Label gather only on class tiles containing this row tile's diagonal.
        # Iotas / hit mask built once and shared by both streams.
        @pl.when(tile_has_targets)
        def _gather_targets():
            row = jax.lax.broadcasted_iota(jnp.int32, (tn, tm), 0)
            col = jax.lax.broadcasted_iota(jnp.int32, (tn, tm), 1)
            hit = (col - row) == (lo - col0)        # i.e. col == lo + row - col0
            t_a[...] += jnp.sum(jnp.where(hit, x_a, 0.0), axis=-1, keepdims=True)
            t_b[...] += jnp.sum(jnp.where(hit, x_b, 0.0), axis=-1, keepdims=True)

        if mask_pad:
            # Ragged-M tail tile only: mask padded lanes out of max / sum-exp.
            # Mask built once and shared by both streams.
            col = col0 + jax.lax.broadcasted_iota(jnp.int32, (tn, tm), 1)
            pad = col >= m_total
            x_a = jnp.where(pad, -jnp.inf, x_a)
            x_b = jnp.where(pad, -jnp.inf, x_b)

        online_update(x_a, m_a, l_a)
        online_update(x_b, m_b, l_b)

    if m_total % tm != 0:
        # Only the last class tile carries padding: keep the hot path mask-free.
        @pl.when(j != last_j)
        def _interior():
            step(mask_pad=False)

        @pl.when(j == last_j)
        def _tail():
            step(mask_pad=True)
    else:
        step(mask_pad=False)

    @pl.when(j == last_j)
    def _finalize():
        lse_a = temp * m_a[...] + jnp.log(l_a[...])
        lse_b = temp * m_b[...] + jnp.log(l_b[...])
        # per-row (loss_a + loss_b); mean over rows and /2 happen outside.
        out_ref[...] = (lse_a - temp * t_a[...]) + (lse_b - temp * t_b[...])


def hard_contrastive_loss(logits_per_a, logits_per_b, temp_param, local_rank=0,
                          tn=None, tm=None):
    n, m = logits_per_a.shape
    assert logits_per_b.shape == (n, m)

    if tn is None:
        if n <= 8:
            tn = n
        else:
            # >= 2 row tiles so v7x's second TensorCore gets work on the "parallel"
            # axis; multiple of 8 sublanes (prefer multiples of 16 for bf16 inputs).
            tn = max(8, min(256, (n // 2) // 8 * 8))
    tn = min(tn, n)

    if tm is None:
        # Large class tiles amortize the ~0.35us/step pipeline overhead; keep
        # 2 streams x 2 pipeline buffers x (tn, tm) f32 comfortably inside VMEM
        # on every generation (incl. v7x's 64 MiB).
        budget = (4 * 1024 * 1024) // (4 * max(tn, 1))     # ~4 MiB per f32 tile
        cap = max(128, min(8192, (budget // 128) * 128))
        tm = m if m <= cap else cap
    tm = min(tm, m)

    n_tiles = pl.cdiv(n, tn)
    m_tiles = pl.cdiv(m, tm)

    rank_arr = jnp.full((1,), local_rank, dtype=jnp.int32)
    # Clamp the temperature once outside the kernel; the kernel gets a ready scalar.
    temp_arr = jnp.clip(jnp.exp(jnp.asarray(temp_param, jnp.float32)),
                        1.0, 100.0).reshape((1,))

    kernel = functools.partial(_hcl_kernel, n, m, tn, tm)

    grid_spec = pltpu.PrefetchScalarGridSpec(
        num_scalar_prefetch=1,                                   # local_rank
        grid=(n_tiles, m_tiles),
        in_specs=[
            pl.BlockSpec(memory_space=pltpu.MemorySpace.SMEM),   # clamped temperature
            pl.BlockSpec((tn, tm), lambda i, j, rank: (i, j)),   # logits_per_a tile
            pl.BlockSpec((tn, tm), lambda i, j, rank: (i, j)),   # logits_per_b tile
        ],
        out_specs=pl.BlockSpec((tn, 1), lambda i, j, rank: (i, 0)),  # per-row loss sums
        scratch_shapes=[pltpu.VMEM((tn, 1), jnp.float32)] * 6,   # m/l/tgt for a and b
    )

    row_losses = pl.pallas_call(
        kernel,
        grid_spec=grid_spec,
        out_shape=jax.ShapeDtypeStruct((n_tiles * tn, 1), jnp.float32),
        compiler_params=pltpu.CompilerParams(
            dimension_semantics=("parallel", "arbitrary"),
            vmem_limit_bytes=48 * 1024 * 1024,
        ),
    )(rank_arr, temp_arr, logits_per_a, logits_per_b)

    # CE_a + CE_b averaged: sum over rows of (row_a + row_b) / (2 * N).
    # Slice to [:n] drops garbage padded rows when N is ragged w.r.t. tn.
    return jnp.sum(row_losses[:n, 0]) / (2.0 * n)


def _reference_loss(logits_per_a, logits_per_b, temp_param, local_rank=0):
    temp = jnp.clip(jnp.exp(temp_param), 1.0, 100.0)
    n = logits_per_a.shape[0]
    labels = jnp.arange(n) + n * local_rank

    def ce(logits):
        z = temp * logits.astype(jnp.float32)
        logp = jax.nn.log_softmax(z, axis=-1)
        return -jnp.mean(logp[jnp.arange(n), labels])

    return 0.5 * (ce(logits_per_a) + ce(logits_per_b))


if __name__ == "__main__":
    key = jax.random.PRNGKey(0)
    temp_param = jnp.float32(3.9)   # module __init__ default

    k_a, k_b, k_c, k_d, k_e, k_f, k_g, k_h = jax.random.split(key, 8)

    # --- Test 1: tiny single-tile case (module's usual [N, N] local shape) ---
    N, M = 8, 8
    la = jax.random.normal(k_a, (N, M), dtype=jnp.float32)
    lb = jax.random.normal(k_b, (N, M), dtype=jnp.float32)
    loss = hard_contrastive_loss(la, lb, temp_param, local_rank=0)
    jax.block_until_ready(loss)
    ref = _reference_loss(la, lb, temp_param, local_rank=0)
    assert jnp.allclose(loss, ref, atol=1e-4, rtol=1e-4), (loss, ref)

    # --- Test 2: multi-tile, ragged M (masked last class tile only), target-tile
    #             skipping, non-zero local_rank, 2 "parallel" row tiles ---
    N2, M2 = 16, 320            # e.g. world size 20, local_rank 3
    la2 = jax.random.normal(k_c, (N2, M2), dtype=jnp.float32)
    lb2 = jax.random.normal(k_d, (N2, M2), dtype=jnp.float32)
    loss2 = hard_contrastive_loss(la2, lb2, temp_param, local_rank=3, tn=8, tm=128)
    jax.block_until_ready(loss2)
    ref2 = _reference_loss(la2, lb2, temp_param, local_rank=3)
    assert jnp.allclose(loss2, ref2, atol=1e-4, rtol=1e-4), (loss2, ref2)

    # --- Test 3: default tile-selection path (megacore row split, full-M class tile) ---
    N3, M3 = 48, 512
    la3 = jax.random.normal(k_e, (N3, M3), dtype=jnp.float32)
    lb3 = jax.random.normal(k_f, (N3, M3), dtype=jnp.float32)
    loss3 = hard_contrastive_loss(la3, lb3, temp_param, local_rank=0)
    jax.block_until_ready(loss3)
    ref3 = _reference_loss(la3, lb3, temp_param, local_rank=0)
    assert jnp.allclose(loss3, ref3, atol=1e-4, rtol=1e-4), (loss3, ref3)

    # --- Test 4: bf16 logits in HBM (half the HBM traffic), upcast inside kernel ---
    N4, M4 = 32, 256            # world size 8, local_rank 7
    la4 = jax.random.normal(k_g, (N4, M4), dtype=jnp.float32).astype(jnp.bfloat16)
    lb4 = jax.random.normal(k_h, (N4, M4), dtype=jnp.float32).astype(jnp.bfloat16)
    loss4 = hard_contrastive_loss(la4, lb4, temp_param, local_rank=7, tn=16, tm=128)
    jax.block_until_ready(loss4)
    ref4 = _reference_loss(la4.astype(jnp.float32), lb4.astype(jnp.float32),
                           temp_param, local_rank=7)
    assert jnp.allclose(loss4, ref4, atol=1e-4, rtol=1e-4), (loss4, ref4)

    print("KERNEL_OK")
</pallas_src>

<mosaic_0001>
module attributes {stable_mosaic.version = 11 : i64} {
  func.func @_hcl_kernel(%arg0: i32, %arg1: i32, %arg2: memref<1xi32, #tpu.memory_space<smem>>, %arg3: memref<1xf32, #tpu.memory_space<smem>>, %arg4: memref<8x8xf32, #tpu.memory_space<vmem>>, %arg5: memref<8x8xf32, #tpu.memory_space<vmem>>, %arg6: memref<8x1xf32, #tpu.memory_space<vmem>>, %arg7: memref<8x1xf32, #tpu.memory_space<vmem>>, %arg8: memref<8x1xf32, #tpu.memory_space<vmem>>, %arg9: memref<8x1xf32, #tpu.memory_space<vmem>>, %arg10: memref<8x1xf32, #tpu.memory_space<vmem>>, %arg11: memref<8x1xf32, #tpu.memory_space<vmem>>, %arg12: memref<8x1xf32, #tpu.memory_space<vmem>>) attributes {dimension_semantics = [#tpu.dimension_semantics<parallel>, #tpu.dimension_semantics<arbitrary>], iteration_bounds = array<i64: 1, 1>, scalar_prefetch = 1 : i64, scratch_operands = 6 : i64, tpu.core_type = #tpu.core_type<tc>, window_params = [{transform_indices = @transform_0, window_bounds = array<i64: 1>}, {transform_indices = @transform_1, window_bounds = array<i64: 8, 8>}, {transform_indices = @transform_2, window_bounds = array<i64: 8, 8>}, {transform_indices = @transform_3, window_bounds = array<i64: 8, 1>}]} {
    %c0 = arith.constant 0 : index
    %0 = memref.load %arg3[%c0] : memref<1xf32, #tpu.memory_space<smem>>
    %c0_0 = arith.constant 0 : index
    %1 = memref.load %arg2[%c0_0] : memref<1xi32, #tpu.memory_space<smem>>
    %c0_i32 = arith.constant 0 : i32
    %2 = arith.cmpi eq, %arg1, %c0_i32 : i32
    %3 = arith.extui %2 : i1 to i32
    %c0_i32_1 = arith.constant 0 : i32
    %4 = arith.cmpi ne, %3, %c0_i32_1 : i32
    scf.if %4 {
      %cst_32 = arith.constant 0xFF800000 : f32
      %61 = vector.broadcast %cst_32 : f32 to vector<8x1xf32>
      %c0_33 = arith.constant 0 : index
      %c0_34 = arith.constant 0 : index
      %62 = vector.load %arg7[%c0_33, %c0_34] : memref<8x1xf32, #tpu.memory_space<vmem>>, vector<8x1xf32>
      tpu.vector_store %arg7[%c0_33, %c0_34], %61 {strides = array<i32>} : memref<8x1xf32, #tpu.memory_space<vmem>>, vector<8x1xf32>,
      %cst_35 = arith.constant 0.000000e+00 : f32
      %63 = vector.broadcast %cst_35 : f32 to vector<8x1xf32>
      %c0_36 = arith.constant 0 : index
      %c0_37 = arith.constant 0 : index
      %64 = vector.load %arg8[%c0_36, %c0_37] : memref<8x1xf32, #tpu.memory_space<vmem>>, vector<8x1xf32>
      tpu.vector_store %arg8[%c0_36, %c0_37], %63 {strides = array<i32>} : memref<8x1xf32, #tpu.memory_space<vmem>>, vector<8x1xf32>,
      %cst_38 = arith.constant 0.000000e+00 : f32
      %65 = vector.broadcast %cst_38 : f32 to vector<8x1xf32>
      %c0_39 = arith.constant 0 : index
      %c0_40 = arith.constant 0 : index
      %66 = vector.load %arg9[%c0_39, %c0_40] : memref<8x1xf32, #tpu.memory_space<vmem>>, vector<8x1xf32>
      tpu.vector_store %arg9[%c0_39, %c0_40], %65 {strides = array<i32>} : memref<8x1xf32, #tpu.memory_space<vmem>>, vector<8x1xf32>,
      %cst_41 = arith.constant 0xFF800000 : f32
      %67 = vector.broadcast %cst_41 : f32 to vector<8x1xf32>
      %c0_42 = arith.constant 0 : index
      %c0_43 = arith.constant 0 : index
      %68 = vector.load %arg10[%c0_42, %c0_43] : memref<8x1xf32, #tpu.memory_space<vmem>>, vector<8x1xf32>
      tpu.vector_store %arg10[%c0_42, %c0_43], %67 {strides = array<i32>} : memref<8x1xf32, #tpu.memory_space<vmem>>, vector<8x1xf32>,
      %cst_44 = arith.constant 0.000000e+00 : f32
      %69 = vector.broadcast %cst_44 : f32 to vector<8x1xf32>
      %c0_45 = arith.constant 0 : index
      %c0_46 = arith.constant 0 : index
      %70 = vector.load %arg11[%c0_45, %c0_46] : memref<8x1xf32, #tpu.memory_space<vmem>>, vector<8x1xf32>
      tpu.vector_store %arg11[%c0_45, %c0_46], %69 {strides = array<i32>} : memref<8x1xf32, #tpu.memory_space<vmem>>, vector<8x1xf32>,
      %cst_47 = arith.constant 0.000000e+00 : f32
      %71 = vector.broadcast %cst_47 : f32 to vector<8x1xf32>
      %c0_48 = arith.constant 0 : index
      %c0_49 = arith.constant 0 : index
      %72 = vector.load %arg12[%c0_48, %c0_49] : memref<8x1xf32, #tpu.memory_space<vmem>>, vector<8x1xf32>
      tpu.vector_store %arg12[%c0_48, %c0_49], %71 {strides = array<i32>} : memref<8x1xf32, #tpu.memory_space<vmem>>, vector<8x1xf32>,
    } else {
    }
    %c8_i32 = arith.constant 8 : i32
    %5 = arith.muli %arg0, %c8_i32 : i32
    %c8_i32_2 = arith.constant 8 : i32
    %6 = arith.muli %c8_i32_2, %1 : i32
    %7 = arith.addi %5, %6 : i32
    %c8_i32_3 = arith.constant 8 : i32
    %8 = arith.muli %arg1, %c8_i32_3 : i32
    %c8_i32_4 = arith.constant 8 : i32
    %9 = arith.addi %7, %c8_i32_4 : i32
    %10 = arith.cmpi slt, %8, %9 : i32
    %c8_i32_5 = arith.constant 8 : i32
    %11 = arith.addi %8, %c8_i32_5 : i32
    %12 = arith.cmpi slt, %7, %11 : i32
    %13 = arith.andi %10, %12 : i1
    %c0_6 = arith.constant 0 : index
    %c0_7 = arith.constant 0 : index
    %14 = vector.load %arg4[%c0_6, %c0_7] : memref<8x8xf32, #tpu.memory_space<vmem>>, vector<8x8xf32>
    %c0_8 = arith.constant 0 : index
    %c0_9 = arith.constant 0 : index
    %15 = vector.load %arg5[%c0_8, %c0_9] : memref<8x8xf32, #tpu.memory_space<vmem>>, vector<8x8xf32>
    %16 = arith.extui %13 : i1 to i32
    %c0_i32_10 = arith.constant 0 : i32
    %17 = arith.cmpi ne, %16, %c0_i32_10 : i32
    scf.if %17 {
      %61 = tpu.iota {dimensions = array<i32: 0>} : vector<8x8xi32>
      %62 = tpu.iota {dimensions = array<i32: 1>} : vector<8x8xi32>
      %63 = arith.subi %62, %61 : vector<8x8xi32>
      %64 = arith.subi %7, %8 : i32
      %65 = vector.broadcast %64 : i32 to vector<8x8xi32>
      %66 = arith.cmpi eq, %63, %65 : vector<8x8xi32>
      %c0_32 = arith.constant 0 : index
      %c0_33 = arith.constant 0 : index
      %67 = vector.load %arg9[%c0_32, %c0_33] : memref<8x1xf32, #tpu.memory_space<vmem>>, vector<8x1xf32>
      %cst_34 = arith.constant 0.000000e+00 : f32
      %68 = vector.broadcast %cst_34 : f32 to vector<8x8xf32>
      %69 = arith.select %66, %14, %68 : vector<8x8xi1>, vector<8x8xf32>
      %cst_35 = arith.constant dense<0.000000e+00> : vector<8xf32>
      %70 = vector.multi_reduction <add>, %69, %cst_35 [1] : vector<8x8xf32> to vector<8xf32>
      %71 = vector.shape_cast %70 : vector<8xf32> to vector<8x1xf32>
      %72 = arith.addf %67, %71 : vector<8x1xf32>
      %c0_36 = arith.constant 0 : index
      %c0_37 = arith.constant 0 : index
      %73 = vector.load %arg9[%c0_36, %c0_37] : memref<8x1xf32, #tpu.memory_space<vmem>>, vector<8x1xf32>
      tpu.vector_store %arg9[%c0_36, %c0_37], %72 {strides = array<i32>} : memref<8x1xf32, #tpu.memory_space<vmem>>, vector<8x1xf32>,
      %c0_38 = arith.constant 0 : index
      %c0_39 = arith.constant 0 : index
      %74 = vector.load %arg12[%c0_38, %c0_39] : memref<8x1xf32, #tpu.memory_space<vmem>>, vector<8x1xf32>
      %cst_40 = arith.constant 0.000000e+00 : f32
      %75 = vector.broadcast %cst_40 : f32 to vector<8x8xf32>
      %76 = arith.select %66, %15, %75 : vector<8x8xi1>, vector<8x8xf32>
      %cst_41 = arith.constant dense<0.000000e+00> : vector<8xf32>
      %77 = vector.multi_reduction <add>, %76, %cst_41 [1] : vector<8x8xf32> to vector<8xf32>
      %78 = vector.shape_cast %77 : vector<8xf32> to vector<8x1xf32>
      %79 = arith.addf %74, %78 : vector<8x1xf32>
      %c0_42 = arith.constant 0 : index
      %c0_43 = arith.constant 0 : index
      %80 = vector.load %arg12[%c0_42, %c0_43] : memref<8x1xf32, #tpu.memory_space<vmem>>, vector<8x1xf32>
      tpu.vector_store %arg12[%c0_42, %c0_43], %79 {strides = array<i32>} : memref<8x1xf32, #tpu.memory_space<vmem>>, vector<8x1xf32>,
    } else {
    }
    %c0_11 = arith.constant 0 : index
    %c0_12 = arith.constant 0 : index
    %18 = vector.load %arg7[%c0_11, %c0_12] : memref<8x1xf32, #tpu.memory_space<vmem>>, vector<8x1xf32>
    %cst = arith.constant dense<0xFF800000> : vector<8xf32>
    %19 = vector.multi_reduction <maximumf>, %14, %cst [1] : vector<8x8xf32> to vector<8xf32>
    %20 = vector.shape_cast %19 : vector<8xf32> to vector<8x1xf32>
    %21 = arith.maximumf %18, %20 : vector<8x1xf32>
    %c0_13 = arith.constant 0 : index
    %c0_14 = arith.constant 0 : index
    %22 = vector.load %arg8[%c0_13, %c0_14] : memref<8x1xf32, #tpu.memory_space<vmem>>, vector<8x1xf32>
    %23 = arith.subf %18, %21 : vector<8x1xf32>
    %24 = vector.broadcast %0 : f32 to vector<8x1xf32>
    %25 = arith.mulf %24, %23 : vector<8x1xf32>
    %26 = math.exp %25 : vector<8x1xf32>
    %27 = arith.mulf %22, %26 : vector<8x1xf32>
    %28 = vector.broadcast %21 : vector<8x1xf32> to vector<8x8xf32>
    %29 = arith.subf %14, %28 : vector<8x8xf32>
    %30 = vector.broadcast %0 : f32 to vector<8x8xf32>
    %31 = arith.mulf %30, %29 : vector<8x8xf32>
    %32 = math.exp %31 : vector<8x8xf32>
    %cst_15 = arith.constant dense<0.000000e+00> : vector<8xf32>
    %33 = vector.multi_reduction <add>, %32, %cst_15 [1] : vector<8x8xf32> to vector<8xf32>
    %34 = vector.shape_cast %33 : vector<8xf32> to vector<8x1xf32>
    %35 = arith.addf %27, %34 : vector<8x1xf32>
    %c0_16 = arith.constant 0 : index
    %c0_17 = arith.constant 0 : index
    %36 = vector.load %arg8[%c0_16, %c0_17] : memref<8x1xf32, #tpu.memory_space<vmem>>, vector<8x1xf32>
    tpu.vector_store %arg8[%c0_16, %c0_17], %35 {strides = array<i32>} : memref<8x1xf32, #tpu.memory_space<vmem>>, vector<8x1xf32>,
    %c0_18 = arith.constant 0 : index
    %c0_19 = arith.constant 0 : index
    %37 = vector.load %arg7[%c0_18, %c0_19] : memref<8x1xf32, #tpu.memory_space<vmem>>, vector<8x1xf32>
    tpu.vector_store %arg7[%c0_18, %c0_19], %21 {strides = array<i32>} : memref<8x1xf32, #tpu.memory_space<vmem>>, vector<8x1xf32>,
    %c0_20 = arith.constant 0 : index
    %c0_21 = arith.constant 0 : index
    %38 = vector.load %arg10[%c0_20, %c0_21] : memref<8x1xf32, #tpu.memory_space<vmem>>, vector<8x1xf32>
    %cst_22 = arith.constant dense<0xFF800000> : vector<8xf32>
    %39 = vector.multi_reduction <maximumf>, %15, %cst_22 [1] : vector<8x8xf32> to vector<8xf32>
    %40 = vector.shape_cast %39 : vector<8xf32> to vector<8x1xf32>
    %41 = arith.maximumf %38, %40 : vector<8x1xf32>
    %c0_23 = arith.constant 0 : index
    %c0_24 = arith.constant 0 : index
    %42 = vector.load %arg11[%c0_23, %c0_24] : memref<8x1xf32, #tpu.memory_space<vmem>>, vector<8x1xf32>
    %43 = arith.subf %38, %41 : vector<8x1xf32>
    %44 = vector.broadcast %0 : f32 to vector<8x1xf32>
    %45 = arith.mulf %44, %43 : vector<8x1xf32>
    %46 = math.exp %45 : vector<8x1xf32>
    %47 = arith.mulf %42, %46 : vector<8x1xf32>
    %48 = vector.broadcast %41 : vector<8x1xf32> to vector<8x8xf32>
    %49 = arith.subf %15, %48 : vector<8x8xf32>
    %50 = vector.broadcast %0 : f32 to vector<8x8xf32>
    %51 = arith.mulf %50, %49 : vector<8x8xf32>
    %52 = math.exp %51 : vector<8x8xf32>
    %cst_25 = arith.constant dense<0.000000e+00> : vector<8xf32>
    %53 = vector.multi_reduction <add>, %52, %cst_25 [1] : vector<8x8xf32> to vector<8xf32>
    %54 = vector.shape_cast %53 : vector<8xf32> to vector<8x1xf32>
    %55 = arith.addf %47, %54 : vector<8x1xf32>
    %c0_26 = arith.constant 0 : index
    %c0_27 = arith.constant 0 : index
    %56 = vector.load %arg11[%c0_26, %c0_27] : memref<8x1xf32, #tpu.memory_space<vmem>>, vector<8x1xf32>
    tpu.vector_store %arg11[%c0_26, %c0_27], %55 {strides = array<i32>} : memref<8x1xf32, #tpu.memory_space<vmem>>, vector<8x1xf32>,
    %c0_28 = arith.constant 0 : index
    %c0_29 = arith.constant 0 : index
    %57 = vector.load %arg10[%c0_28, %c0_29] : memref<8x1xf32, #tpu.memory_space<vmem>>, vector<8x1xf32>
    tpu.vector_store %arg10[%c0_28, %c0_29], %41 {strides = array<i32>} : memref<8x1xf32, #tpu.memory_space<vmem>>, vector<8x1xf32>,
    %c0_i32_30 = arith.constant 0 : i32
    %58 = arith.cmpi eq, %arg1, %c0_i32_30 : i32
    %59 = arith.extui %58 : i1 to i32
    %c0_i32_31 = arith.constant 0 : i32
    %60 = arith.cmpi ne, %59, %c0_i32_31 : i32
    scf.if %60 {
      %c0_32 = arith.constant 0 : index
      %c0_33 = arith.constant 0 : index
      %61 = vector.load %arg7[%c0_32, %c0_33] : memref<8x1xf32, #tpu.memory_space<vmem>>, vector<8x1xf32>
      %62 = vector.broadcast %0 : f32 to vector<8x1xf32>
      %63 = arith.mulf %62, %61 : vector<8x1xf32>
      %c0_34 = arith.constant 0 : index
      %c0_35 = arith.constant 0 : index
      %64 = vector.load %arg8[%c0_34, %c0_35] : memref<8x1xf32, #tpu.memory_space<vmem>>, vector<8x1xf32>
      %65 = math.log %64 : vector<8x1xf32>
      %66 = arith.addf %63, %65 : vector<8x1xf32>
      %c0_36 = arith.constant 0 : index
      %c0_37 = arith.constant 0 : index
      %67 = vector.load %arg10[%c0_36, %c0_37] : memref<8x1xf32, #tpu.memory_space<vmem>>, vector<8x1xf32>
      %68 = vector.broadcast %0 : f32 to vector<8x1xf32>
      %69 = arith.mulf %68, %67 : vector<8x1xf32>
      %c0_38 = arith.constant 0 : index
      %c0_39 = arith.constant 0 : index
      %70 = vector.load %arg11[%c0_38, %c0_39] : memref<8x1xf32, #tpu.memory_space<vmem>>, vector<8x1xf32>
      %71 = math.log %70 : vector<8x1xf32>
      %72 = arith.addf %69, %71 : vector<8x1xf32>
      %c0_40 = arith.constant 0 : index
      %c0_41 = arith.constant 0 : index
      %73 = vector.load %arg9[%c0_40, %c0_41] : memref<8x1xf32, #tpu.memory_space<vmem>>, vector<8x1xf32>
      %74 = vector.broadcast %0 : f32 to vector<8x1xf32>
      %75 = arith.mulf %74, %73 : vector<8x1xf32>
      %76 = arith.subf %66, %75 : vector<8x1xf32>
      %c0_42 = arith.constant 0 : index
      %c0_43 = arith.constant 0 : index
      %77 = vector.load %arg12[%c0_42, %c0_43] : memref<8x1xf32, #tpu.memory_space<vmem>>, vector<8x1xf32>
      %78 = vector.broadcast %0 : f32 to vector<8x1xf32>
      %79 = arith.mulf %78, %77 : vector<8x1xf32>
      %80 = arith.subf %72, %79 : vector<8x1xf32>
      %81 = arith.addf %76, %80 : vector<8x1xf32>
      %c0_44 = arith.constant 0 : index
      %c0_45 = arith.constant 0 : index
      %82 = vector.load %arg6[%c0_44, %c0_45] : memref<8x1xf32, #tpu.memory_space<vmem>>, vector<8x1xf32>
      tpu.vector_store %arg6[%c0_44, %c0_45], %81 {strides = array<i32>} : memref<8x1xf32, #tpu.memory_space<vmem>>, vector<8x1xf32>,
    } else {
    }
    return
  }
  func.func @transform_0(%arg0: i32, %arg1: i32, %arg2: memref<1xi32, #tpu.memory_space<smem>>) -> i32 {
    %c0_i32 = arith.constant 0 : i32
    %c0_i32_0 = arith.constant 0 : i32
    return %c0_i32 : i32
  }
  func.func @transform_1(%arg0: i32, %arg1: i32, %arg2: memref<1xi32, #tpu.memory_space<smem>>) -> (i32, i32) {
    %c0_i32 = arith.constant 0 : i32
    return %arg0, %arg1 : i32, i32
  }
  func.func @transform_2(%arg0: i32, %arg1: i32, %arg2: memref<1xi32, #tpu.memory_space<smem>>) -> (i32, i32) {
    %c0_i32 = arith.constant 0 : i32
    return %arg0, %arg1 : i32, i32
  }
  func.func @transform_3(%arg0: i32, %arg1: i32, %arg2: memref<1xi32, #tpu.memory_space<smem>>) -> (i32, i32) {
    %c0_i32 = arith.constant 0 : i32
    %c0_i32_0 = arith.constant 0 : i32
    return %arg0, %c0_i32 : i32, i32
  }
}

</mosaic_0001>

<bundles_post_ra>
// kernel: tpu_custom_call.1
= control target key start
LH: loop header
LB: loop body
LE: loop exit
PB: predicated region body
PF: predicated region fallthrough
CT: control target
= control target key end

     0   :  { %11 = vsyncpa [#allocation12], 0  ;;  %s207_s15 = smov [#allocation11]   ;;  %s277_s0 = inlined_call_operand.<no memory space> [shape: s32[1], index: 0, kind: input, shape index: {}]   ;;  %s278_s1 = inlined_call_operand.<no memory space> [shape: f32[1], index: 1, kind: input, shape index: {}]   ;;  %s279_s2 = inlined_call_operand.hbm [shape: f32[8,8], index: 2, kind: input, shape index: {}]   ;;  %s280_s3 = inlined_call_operand.vmem [shape: f32[8,8], index: 3, kind: input, shape index: {}]   ;;  %s281_s4 = inlined_call_operand.vmem [shape: f32[8,1], index: 4, kind: output, shape index: {}]  }
   0x1   :  { %s20_s16 = sshll.u32 %s207_s15, 4  ;;  %s183_s19 = scalar_lea.hbm %s279_s2, 128  ;;  %s21_s16 = int_to_ptr.vmem [resolvable:$true] %s20_s16 }
   0x2   :  { %p184_p0 = scmp.ne.s32.totalorder %s279_s2, %s183_s19  ;;  %p187_p1 = scmp.lt.u32.totalorder %s183_s19, %s279_s2 }
   0x4   :  { %p189_p2 = pnand %p187_p1, %p184_p0 }
   0x6   :  { %192 = shalt.err (!%p189_p2)
}
   0x7   :  { %s193_s24 = scalar_lea.vmem %s21_s16, 128  ;;  %p198_p4 = scmp.lt.s32.totalorder %s21_s16, %s21_s16 }
   0x8   :  { %p194_p3 = scmp.ne.s32.totalorder %s21_s16, %s193_s24  ;;  %p199_p5 = scmp.lt.s32.totalorder %s193_s24, %s193_s24 }
   0xa   :  { %p200_p6 = por %p199_p5, %p198_p4 }
   0xc   :  { %p201_p7 = pnand %p200_p6, %p194_p3 }
   0xe   :  { %204 = shalt.err (!%p201_p7)
}
   0xf   :  { %23 = dma.hbm_to_vmem [thread:$0]  %s279_s2, 128, %s21_s16, [#allocation12]  }
  0x10   :  { %205 = dma.done.wait [#allocation12], 128  }
  0x11   :  { %206 = vsyncadd [#allocation12], 4294967168  ;;  %vm35_vm0 = vcmask 7168   ;;  %s163_s29 = sshll.u32 %s277_s0, 3  ;;  %v208_v0 = vmov -inf   ;;  %v209_v1 = vmov 0.0  }
  0x12   :  { %36 = vst.msk [vmem:[#allocation2] sm:$0xff] %vm35_vm0, %v208_v0  ;;  %39 = vst.msk [vmem:[#allocation5] sm:$0xff] %vm35_vm0, %v208_v0  ;;  %s46_s2 = sadd.s32 8, %s163_s29  ;;  %p49_p8 = scmp.lt.s32.totalorder %s163_s29, 8  ;;  %v52_v2 = vld [vmem:[#allocation11] sm:$0xff]  ;;  %v53_v3 = vld [vmem:[%s280_s3] sm:$0xff] }
  0x13   :  { %37 = vst.msk [vmem:[#allocation3] sm:$0xff] %vm35_vm0, %v209_v1  ;;  %38 = vst.msk [vmem:[#allocation4] sm:$0xff] %vm35_vm0, %v209_v1  ;;  %p164_p9 = scmp.gt.s32.totalorder %s46_s2, 0 }
  0x14   :  { %40 = vst.msk [vmem:[#allocation6] sm:$0xff] %vm35_vm0, %v209_v1  ;;  %41 = vst.msk [vmem:[#allocation7] sm:$0xff] %vm35_vm0, %v209_v1 }
  0x15   :  { %p50_p10 = pnand %p164_p9, %p49_p8 }
  0x16   :  { %v56_v4 = vlaneseq (!%p50_p10)  ;;  %v62_v7 = vstv (!%p50_p10), %s163_s29  ;;  %vm66_vm1 = vcmask (!%p50_p10), 64512  }
  0x17   :  { %55 = sbr.rel (%p50_p10) target bundleno = 180 (0xb4), region = 25 }
  0x18   :  { %v57_v5 = vshrl.u32 (!%p50_p10), %v56_v4, 7  ;;  %v59_v6 = vand.u32 (!%p50_p10), 127, %v56_v4 }
  0x1a   :  { %v60_v8 = vsub.s32 (!%p50_p10), %v59_v6, %v57_v5  ;;  %v64_v13 = vld [vmem:[#allocation4] sm:$0xff] (!%p50_p10) }
  0x1b   :  { %v73_v16 = vld [vmem:[#allocation7] sm:$0xff] (!%p50_p10) }
  0x1c   :  { %vm63_vm2 = vcmp.eq.s32.totalorder (!%p50_p10), %v60_v8, %v62_v7 }
  0x1d   :  { %v65_v9 = vsel (!%p50_p10), %vm63_vm2, %v52_v2, 0.0  ;;  %v74_v10 = vsel (!%p50_p10), %vm63_vm2, %v53_v3, 0.0 }
  0x1e   :  { %v67_v11 = vsel %vm66_vm1, %v65_v9, 0.0  ;;  %v75_v12 = vsel %vm66_vm1, %v74_v10, 0.0 }
  0x1f   :  { %68 = vadd.xlane.f32.xlu0 %v67_v11 }
  0x23   :  { %76 = vadd.xlane.f32.xlu0 %v75_v12 }
  0xac   :  { %v69_v14 = vpop.xlane.xlu0 %68 }
  0xad   :  { %v70_v15 = vadd.f32 %v69_v14, %v64_v13 }
  0xaf   :  { %72 = vst.msk [vmem:[#allocation4] sm:$0xff] %vm35_vm0, %v70_v15 }
  0xb0   :  { %v77_v17 = vpop.xlane.xlu0 %76 }
  0xb1   :  { %v78_v18 = vadd.f32 %v77_v17, %v73_v16 }
  0xb3   :  { %79 = vst.msk [vmem:[#allocation7] sm:$0xff] %vm35_vm0, %v78_v18 }
  0xb4 PF:  { %vm81_vm3 = vcmask 64512   ;;  %v210_v21 = vmov 0   ;;  %v80_v22 = vld [vmem:[#allocation2] sm:$0xff]  ;;  %v109_v25 = vld [vmem:[#allocation5] sm:$0xff]  ;;  %v88_v32 = vstv %s278_s1  ;;  %v86_v48 = vld [vmem:[#allocation3] sm:$0xff] }
  0xb5   :  { %v82_v19 = vsel %vm81_vm3, %v52_v2, -inf  ;;  %v110_v20 = vsel %vm81_vm3, %v53_v3, -inf  ;;  %169 = vset.pattern.permute.xlu1 %v210_v21  ;;  %170 = vset.pattern.permute.xlu0 %v210_v21  ;;  %v114_v52 = vld [vmem:[#allocation6] sm:$0xff] }
  0xb6   :  { %83 = vmax.xlane.f32.xlu0 %v82_v19  ;;  %v150_v61 = vld [vmem:[#allocation4] sm:$0xff] }
  0xba   :  { %111 = vmax.xlane.f32.xlu0 %v110_v20  ;;  %v153_v63 = vld [vmem:[#allocation7] sm:$0xff] }
  0xbb   :  { %v154_v4 = vmul.f32 %v153_v63, %v88_v32 }
 0x143   :  { %v84_v23 = vpop.xlane.xlu0 %83 }
 0x144   :  { %v85_v24 = vmax.f32 %v80_v22, %v84_v23 }
 0x146   :  { %v87_v26 = vsub.f32 %v80_v22, %v85_v24  ;;  %108 = vst.msk [vmem:[#allocation2] sm:$0xff] %vm35_vm0, %v85_v24  ;;  %95 = vperm.xlu1 %169, %v85_v24  }
 0x147   :  { %v112_v27 = vpop.xlane.xlu0 %111 }
 0x148   :  { %v113_v28 = vmax.f32 %v109_v25, %v112_v27  ;;  %v89_v43 = vmul.f32 %v88_v32, %v87_v26 }
 0x14a   :  { %v115_v29 = vsub.f32 %v109_v25, %v113_v28  ;;  %134 = vst.msk [vmem:[#allocation5] sm:$0xff] %vm35_vm0, %v113_v28  ;;  %122 = vperm.xlu1 %169, %v113_v28   ;;  %v90_v44 = vmul.f32 1.442695, %v89_v43 }
 0x14c   :  { %v116_v45 = vmul.f32 %v115_v29, %v88_v32 }
 0x14d   :  { %v138_v60 = vld [vmem:[#allocation2] sm:$0xff] }
 0x14e   :  { %v117_v46 = vmul.f32 1.442695, %v116_v45  ;;  %v139_v1 = vmul.f32 %v138_v60, %v88_v32 }
 0x151   :  { %v144_v0 = vld [vmem:[#allocation5] sm:$0xff] }
 0x152   :  { %v145_v5 = vmul.f32 %v144_v0, %v88_v32 }
 0x1c5   :  { %v96_v30 = vpop.permute.xlu1 %95 }
 0x1c6   :  { %v98_v31 = vsub.f32 %v52_v2, %v96_v30 }
 0x1c8   :  { %v99_v33 = vmul.f32 %v98_v31, %v88_v32 }
 0x1c9   :  { %v123_v34 = vpop.permute.xlu1 %122 }
 0x1ca   :  { %v100_v35 = vmul.f32 1.442695, %v99_v33  ;;  %v125_v36 = vsub.f32 %v53_v3, %v123_v34  ;;  %v151_v3 = vmul.f32 %v150_v61, %v88_v32 }
 0x1cc   :  { %171 = vpow2.f32 %v100_v35  ;;  %v126_v37 = vmul.f32 %v125_v36, %v88_v32 }
 0x1ce   :  { %v127_v38 = vmul.f32 1.442695, %v126_v37 }
 0x1d0   :  { %173 = vpow2.f32 %v127_v38 }
 0x1d1   :  { %175 = vpow2.f32 %v90_v44 }
 0x1d2   :  { %177 = vpow2.f32 %v117_v46 }
 0x1d6   :  { %v172_v39 = vpop.eup %171 }
 0x1d7   :  { %v102_v40 = vsel %vm81_vm3, %v172_v39, 0.0 }
 0x1d8   :  { %103 = vadd.xlane.f32.xlu0 %v102_v40 }
 0x1da   :  { %v174_v41 = vpop.eup %173 }
 0x1db   :  { %v129_v42 = vsel %vm81_vm3, %v174_v41, 0.0  ;;  %v176_v47 = vpop.eup %175 }
 0x1dc   :  { %130 = vadd.xlane.f32.xlu1 %v129_v42  ;;  %v92_v49 = vmul.f32 %v176_v47, %v86_v48  ;;  %v178_v50 = vpop.eup %177 }
 0x1dd   :  { %v119_v54 = vmul.f32 %v178_v50, %v114_v52 }
 0x265   :  { %v104_v51 = vpop.xlane.xlu0 %103 }
 0x266   :  { %v105_v53 = vadd.f32 %v104_v51, %v92_v49 }
 0x268   :  { %107 = vst.msk [vmem:[#allocation3] sm:$0xff] %vm35_vm0, %v105_v53 }
 0x269   :  { %v131_v55 = vpop.xlane.xlu1 %130 }
 0x26a   :  { %v132_v56 = vadd.f32 %v131_v55, %v119_v54 }
 0x26c   :  { %133 = vst.msk [vmem:[#allocation6] sm:$0xff] %vm35_vm0, %v132_v56 }
 0x26f   :  { %v140_v57 = vld [vmem:[#allocation3] sm:$0xff] }
 0x270   :  { %179 = vlog2.f32 %v140_v57 }
 0x273   :  { %v146_v58 = vld [vmem:[#allocation6] sm:$0xff] }
 0x274   :  { %181 = vlog2.f32 %v146_v58 }
 0x27a   :  { %v180_v59 = vpop.eup %179 }
 0x27b   :  { %v142_v62 = vmul.f32 0.6931472, %v180_v59 }
 0x27d   :  { %v143_v6 = vadd.f32 %v142_v62, %v139_v1 }
 0x27e   :  { %v182_v2 = vpop.eup %181 }
 0x27f   :  { %v148_v7 = vmul.f32 0.6931472, %v182_v2  ;;  %v152_v9 = vsub.f32 %v143_v6, %v151_v3 }
 0x281   :  { %v149_v8 = vadd.f32 %v148_v7, %v145_v5 }
 0x283   :  { %v155_v10 = vsub.f32 %v149_v8, %v154_v4 }
 0x285   :  { %v156_v11 = vadd.f32 %v155_v10, %v152_v9 }
 0x287   :  { %157 = vst.msk [vmem:[%s281_s4] sm:$0xff] %vm35_vm0, %v156_v11 }
 0x288   :  { %162 = vsyncpa [#allocation12], 1 }

</bundles_post_ra>
